<compile_context>
chip_gen: v5e
topology: v5e:2x2
jax: 0.10.0
libtpu: 0.0.40
codegen_flags: <defaults>
</compile_context>

<pallas_src>
import math

import jax
import jax.numpy as jnp
from jax.experimental import pallas as pl
from jax.experimental.pallas import tpu as pltpu


def arv_diffusion_kernel(sig_ref, x_ref, noise_ref, wx_ref, ws_ref, bias_ref,
                         out_ref, acc_ref):
    """One (batch, time-tile) step of the ARVDiffusion forward.

    Refs (VMEM blocks):
      sig_ref   : (1, 1, Tt)   per-timestep sigmas (already split-repeated)
      x_ref     : (1, C, Tt)   clean signal
      noise_ref : (1, C, Tt)   gaussian noise
      wx_ref    : (C, C)       net weight acting on x_noisy channels
      ws_ref    : (C, 1)       net weight acting on the sigma channel
      bias_ref  : (C, 1)       net bias
      out_ref   : (1, 1, 1)    per-batch sum of squared errors (written at last tile)
      acc_ref   : (C, Tt)      VMEM scratch: element-wise partial sums of diff^2
    """
    j = pl.program_id(1)

    @pl.when(j == 0)
    def _():
        acc_ref[...] = jnp.zeros_like(acc_ref)

    sig = sig_ref[0]        # (1, Tt)
    x = x_ref[0]            # (C, Tt)
    noise = noise_ref[0]    # (C, Tt)

    # alpha/beta noise schedule: angle = sigma * pi / 2
    angle = sig * (math.pi * 0.5)
    alpha = jnp.cos(angle)  # (1, Tt) -- broadcasts over channels
    beta = jnp.sin(angle)

    x_noisy = alpha * x + beta * noise          # (C, Tt)
    v_target = alpha * noise - beta * x         # (C, Tt)

    # net(channels) where channels = concat([x_noisy, sigmas], dim=1), net = 1x1 conv
    # (C+1)->C.  Split the weight so no concat is needed:
    #   v_pred = W[:, :C] @ x_noisy + W[:, C:] * sigmas + bias
    c = x.shape[0]
    if c <= 16:
        # Tiny channel count: a 4x4 matmul wastes >99% of an MXU pass, so unroll the
        # contraction as C broadcasted multiply-adds on the VPU (hidden under the DMA).
        wx = wx_ref[...]                                     # (C, C)
        v_pred = ws_ref[...] * sig + bias_ref[...]           # (C, Tt)
        for ci in range(c):
            v_pred = v_pred + wx[:, ci:ci + 1] * x_noisy[ci:ci + 1, :]
    else:
        v_pred = (
            jnp.dot(wx_ref[...], x_noisy, preferred_element_type=jnp.float32)
            + ws_ref[...] * sig
            + bias_ref[...]
        )                                                    # (C, Tt)

    diff = v_pred - v_target
    # Pure element-wise accumulation (VPU); the single cross-lane reduce happens once
    # per batch below, keeping XLU reduces and masked (1,1) stores off the per-step path.
    acc_ref[...] += diff * diff

    @pl.when(j == pl.num_programs(1) - 1)
    def _():
        out_ref[0] = jnp.sum(acc_ref[...], axis=(0, 1), keepdims=True)


def _pick_t_tile(t, max_t_tile):
    """Largest multiple of 128 that divides t, capped at max_t_tile."""
    assert t % 128 == 0, "time length must be a multiple of 128"
    t_tile = max(128, (min(t, max_t_tile) // 128) * 128)
    while t % t_tile != 0:
        t_tile -= 128
    return t_tile


def arv_diffusion_loss(x, sigmas_splits, noise, w, bias, num_splits, max_t_tile=8192):
    """Computes the ARVDiffusion v-objective MSE loss.

    x             : (B, C, T) float32
    sigmas_splits : (B, 1, num_splits) float32 (uniform [0,1) draws)
    noise         : (B, C, T) float32 (standard normal draws)
    w             : (C, C+1) float32   -- 1x1-conv weight of the synthetic net
    bias          : (C,) float32       -- 1x1-conv bias
    """
    b, c, t = x.shape
    assert t % num_splits == 0, "length must be divisible by num_splits"
    split_length = t // num_splits

    # Big time tiles: per-grid-step overhead dominates at 128-wide tiles.
    # Double-buffered VMEM working set ~ 2*(2C+1)*t_tile*4B + C*t_tile*4B (scratch):
    # for C=4, t_tile=8192 this is <1 MiB, far under scoped VMEM on v5e/v6e/v7x.
    t_tile = _pick_t_tile(t, max_t_tile)

    # repeat 'b 1 n -> b 1 (n l)'  (each split's sigma repeated split_length times)
    sigmas = jnp.repeat(sigmas_splits, split_length, axis=2)  # (B, 1, T)

    wx = w[:, :c]                       # (C, C)
    ws = w[:, c:c + 1]                  # (C, 1)
    bias2 = bias.reshape(c, 1)          # (C, 1)

    grid = (b, t // t_tile)

    # Per-batch partial sums so the batch axis can be "parallel" (v7x megacore) without
    # racing on a shared accumulator; time (reduction) axis is innermost + "arbitrary".
    partial = pl.pallas_call(
        arv_diffusion_kernel,
        out_shape=jax.ShapeDtypeStruct((b, 1, 1), jnp.float32),
        grid_spec=pltpu.PrefetchScalarGridSpec(
            num_scalar_prefetch=0,
            grid=grid,
            in_specs=[
                pl.BlockSpec((1, 1, t_tile), lambda i, j: (i, 0, j)),   # sigmas
                pl.BlockSpec((1, c, t_tile), lambda i, j: (i, 0, j)),   # x
                pl.BlockSpec((1, c, t_tile), lambda i, j: (i, 0, j)),   # noise
                pl.BlockSpec((c, c), lambda i, j: (0, 0)),              # wx (resident)
                pl.BlockSpec((c, 1), lambda i, j: (0, 0)),              # ws (resident)
                pl.BlockSpec((c, 1), lambda i, j: (0, 0)),              # bias (resident)
            ],
            out_specs=pl.BlockSpec((1, 1, 1), lambda i, j: (i, 0, 0)),  # per-batch sum
            scratch_shapes=[pltpu.VMEM((c, t_tile), jnp.float32)],      # partial-sum acc
        ),
        compiler_params=pltpu.CompilerParams(
            dimension_semantics=("parallel", "arbitrary"),
        ),
    )(sigmas, x, noise, wx, ws, bias2)

    # mse_loss default reduction='mean'
    return jnp.sum(partial) / (b * c * t)


def reference_loss(x, sigmas_splits, noise, w, bias, num_splits):
    """Plain-JAX reference mirroring the PyTorch forward."""
    b, c, t = x.shape
    split_length = t // num_splits
    sigmas = jnp.repeat(sigmas_splits, split_length, axis=2)          # (B,1,T)
    angle = sigmas * (math.pi / 2)
    alphas, betas = jnp.cos(angle), jnp.sin(angle)
    x_noisy = alphas * x + betas * noise
    v_target = alphas * noise - betas * x
    channels = jnp.concatenate([x_noisy, sigmas], axis=1)             # (B,C+1,T)
    # net = 1x1 Conv1d (C+1 -> C)
    v_pred = jnp.einsum("oc,bct->bot", w, channels) + bias[None, :, None]
    return jnp.mean((v_pred - v_target) ** 2)


if __name__ == "__main__":
    B, C = 2, 4
    LENGTH = 128
    NUM_SPLITS = 8

    key = jax.random.PRNGKey(0)
    k_x, k_sig, k_noise, k_w, k_b = jax.random.split(key, 5)

    x = jax.random.normal(k_x, (B, C, LENGTH), dtype=jnp.float32)
    sigmas_splits = jax.random.uniform(k_sig, (B, 1, NUM_SPLITS), dtype=jnp.float32)
    noise = jax.random.normal(k_noise, (B, C, LENGTH), dtype=jnp.float32)

    # synthetic net parameters: 1x1 Conv1d((C+1) -> C)
    w = jax.random.normal(k_w, (C, C + 1), dtype=jnp.float32) * 0.1
    bias = jax.random.normal(k_b, (C,), dtype=jnp.float32) * 0.1

    loss = arv_diffusion_loss(x, sigmas_splits, noise, w, bias, NUM_SPLITS)
    loss = jax.block_until_ready(loss)

    ref = reference_loss(x, sigmas_splits, noise, w, bias, NUM_SPLITS)
    assert jnp.allclose(loss, ref, rtol=1e-5, atol=1e-5), (loss, ref)

    print("KERNEL_OK")
</pallas_src>

<mosaic_0001>
module attributes {stable_mosaic.version = 11 : i64} {
  func.func @arv_diffusion_kernel(%arg0: i32, %arg1: i32, %arg2: memref<1x1x128xf32, #tpu.memory_space<vmem>>, %arg3: memref<1x4x128xf32, #tpu.memory_space<vmem>>, %arg4: memref<1x4x128xf32, #tpu.memory_space<vmem>>, %arg5: memref<4x4xf32, #tpu.memory_space<vmem>>, %arg6: memref<4x1xf32, #tpu.memory_space<vmem>>, %arg7: memref<4x1xf32, #tpu.memory_space<vmem>>, %arg8: memref<1x1x1xf32, #tpu.memory_space<vmem>>, %arg9: memref<4x128xf32, #tpu.memory_space<vmem>>) attributes {dimension_semantics = [#tpu.dimension_semantics<parallel>, #tpu.dimension_semantics<arbitrary>], iteration_bounds = array<i64: 2, 1>, scalar_prefetch = 0 : i64, scratch_operands = 1 : i64, tpu.core_type = #tpu.core_type<tc>, window_params = [{transform_indices = @transform_0, window_bounds = array<i64: 1, 1, 128>}, {transform_indices = @transform_1, window_bounds = array<i64: 1, 4, 128>}, {transform_indices = @transform_2, window_bounds = array<i64: 1, 4, 128>}, {pipeline_mode = #tpu.pipeline_mode<synchronous>, transform_indices = @transform_3, window_bounds = array<i64: 4, 4>}, {pipeline_mode = #tpu.pipeline_mode<synchronous>, transform_indices = @transform_4, window_bounds = array<i64: 4, 1>}, {pipeline_mode = #tpu.pipeline_mode<synchronous>, transform_indices = @transform_5, window_bounds = array<i64: 4, 1>}, {transform_indices = @transform_6, window_bounds = array<i64: 1, 1, 1>}]} {
    %c0_i32 = arith.constant 0 : i32
    %0 = arith.cmpi eq, %arg1, %c0_i32 : i32
    %1 = arith.extui %0 : i1 to i32
    %c0_i32_0 = arith.constant 0 : i32
    %2 = arith.cmpi ne, %1, %c0_i32_0 : i32
    scf.if %2 {
      %cst_21 = arith.constant 0.000000e+00 : f32
      %63 = vector.broadcast %cst_21 : f32 to vector<4x128xf32>
      %c0_22 = arith.constant 0 : index
      %c0_23 = arith.constant 0 : index
      %64 = vector.load %arg9[%c0_22, %c0_23] : memref<4x128xf32, #tpu.memory_space<vmem>>, vector<4x128xf32>
      tpu.vector_store %arg9[%c0_22, %c0_23], %63 {strides = array<i32>} : memref<4x128xf32, #tpu.memory_space<vmem>>, vector<4x128xf32>,
    } else {
    }
    %c0 = arith.constant 0 : index
    %c0_1 = arith.constant 0 : index
    %c0_2 = arith.constant 0 : index
    %3 = vector.load %arg2[%c0, %c0_1, %c0_2] : memref<1x1x128xf32, #tpu.memory_space<vmem>>, vector<1x1x128xf32>
    %4 = vector.shape_cast %3 : vector<1x1x128xf32> to vector<1x128xf32>
    %c0_3 = arith.constant 0 : index
    %c0_4 = arith.constant 0 : index
    %c0_5 = arith.constant 0 : index
    %5 = vector.load %arg3[%c0_3, %c0_4, %c0_5] : memref<1x4x128xf32, #tpu.memory_space<vmem>>, vector<1x4x128xf32>
    %6 = vector.shape_cast %5 : vector<1x4x128xf32> to vector<4x128xf32>
    %c0_6 = arith.constant 0 : index
    %c0_7 = arith.constant 0 : index
    %c0_8 = arith.constant 0 : index
    %7 = vector.load %arg4[%c0_6, %c0_7, %c0_8] : memref<1x4x128xf32, #tpu.memory_space<vmem>>, vector<1x4x128xf32>
    %8 = vector.shape_cast %7 : vector<1x4x128xf32> to vector<4x128xf32>
    %cst = arith.constant 1.57079637 : f32
    %9 = vector.broadcast %cst : f32 to vector<1x128xf32>
    %10 = arith.mulf %4, %9 : vector<1x128xf32>
    %11 = math.cos %10 : vector<1x128xf32>
    %12 = math.sin %10 : vector<1x128xf32>
    %13 = vector.broadcast %11 : vector<1x128xf32> to vector<4x128xf32>
    %14 = arith.mulf %13, %6 : vector<4x128xf32>
    %15 = vector.broadcast %12 : vector<1x128xf32> to vector<4x128xf32>
    %16 = arith.mulf %15, %8 : vector<4x128xf32>
    %17 = arith.addf %14, %16 : vector<4x128xf32>
    %18 = vector.broadcast %11 : vector<1x128xf32> to vector<4x128xf32>
    %19 = arith.mulf %18, %8 : vector<4x128xf32>
    %20 = vector.broadcast %12 : vector<1x128xf32> to vector<4x128xf32>
    %21 = arith.mulf %20, %6 : vector<4x128xf32>
    %22 = arith.subf %19, %21 : vector<4x128xf32>
    %c0_9 = arith.constant 0 : index
    %c0_10 = arith.constant 0 : index
    %23 = vector.load %arg5[%c0_9, %c0_10] : memref<4x4xf32, #tpu.memory_space<vmem>>, vector<4x4xf32>
    %c0_11 = arith.constant 0 : index
    %c0_12 = arith.constant 0 : index
    %24 = vector.load %arg6[%c0_11, %c0_12] : memref<4x1xf32, #tpu.memory_space<vmem>>, vector<4x1xf32>
    %25 = vector.broadcast %24 : vector<4x1xf32> to vector<4x128xf32>
    %26 = vector.broadcast %4 : vector<1x128xf32> to vector<4x128xf32>
    %27 = arith.mulf %25, %26 : vector<4x128xf32>
    %c0_13 = arith.constant 0 : index
    %c0_14 = arith.constant 0 : index
    %28 = vector.load %arg7[%c0_13, %c0_14] : memref<4x1xf32, #tpu.memory_space<vmem>>, vector<4x1xf32>
    %29 = vector.broadcast %28 : vector<4x1xf32> to vector<4x128xf32>
    %30 = arith.addf %27, %29 : vector<4x128xf32>
    %31 = vector.extract_strided_slice %23 {offsets = [0, 0], sizes = [4, 1], strides = [1, 1]} : vector<4x4xf32> to vector<4x1xf32>
    %32 = vector.extract_strided_slice %17 {offsets = [0, 0], sizes = [1, 128], strides = [1, 1]} : vector<4x128xf32> to vector<1x128xf32>
    %33 = vector.broadcast %31 : vector<4x1xf32> to vector<4x128xf32>
    %34 = vector.broadcast %32 : vector<1x128xf32> to vector<4x128xf32>
    %35 = arith.mulf %33, %34 : vector<4x128xf32>
    %36 = arith.addf %30, %35 : vector<4x128xf32>
    %37 = vector.extract_strided_slice %23 {offsets = [0, 1], sizes = [4, 1], strides = [1, 1]} : vector<4x4xf32> to vector<4x1xf32>
    %38 = vector.extract_strided_slice %17 {offsets = [1, 0], sizes = [1, 128], strides = [1, 1]} : vector<4x128xf32> to vector<1x128xf32>
    %39 = vector.broadcast %37 : vector<4x1xf32> to vector<4x128xf32>
    %40 = vector.broadcast %38 : vector<1x128xf32> to vector<4x128xf32>
    %41 = arith.mulf %39, %40 : vector<4x128xf32>
    %42 = arith.addf %36, %41 : vector<4x128xf32>
    %43 = vector.extract_strided_slice %23 {offsets = [0, 2], sizes = [4, 1], strides = [1, 1]} : vector<4x4xf32> to vector<4x1xf32>
    %44 = vector.extract_strided_slice %17 {offsets = [2, 0], sizes = [1, 128], strides = [1, 1]} : vector<4x128xf32> to vector<1x128xf32>
    %45 = vector.broadcast %43 : vector<4x1xf32> to vector<4x128xf32>
    %46 = vector.broadcast %44 : vector<1x128xf32> to vector<4x128xf32>
    %47 = arith.mulf %45, %46 : vector<4x128xf32>
    %48 = arith.addf %42, %47 : vector<4x128xf32>
    %49 = vector.extract_strided_slice %23 {offsets = [0, 3], sizes = [4, 1], strides = [1, 1]} : vector<4x4xf32> to vector<4x1xf32>
    %50 = vector.extract_strided_slice %17 {offsets = [3, 0], sizes = [1, 128], strides = [1, 1]} : vector<4x128xf32> to vector<1x128xf32>
    %51 = vector.broadcast %49 : vector<4x1xf32> to vector<4x128xf32>
    %52 = vector.broadcast %50 : vector<1x128xf32> to vector<4x128xf32>
    %53 = arith.mulf %51, %52 : vector<4x128xf32>
    %54 = arith.addf %48, %53 : vector<4x128xf32>
    %55 = arith.subf %54, %22 : vector<4x128xf32>
    %c0_15 = arith.constant 0 : index
    %c0_16 = arith.constant 0 : index
    %56 = vector.load %arg9[%c0_15, %c0_16] : memref<4x128xf32, #tpu.memory_space<vmem>>, vector<4x128xf32>
    %57 = arith.mulf %55, %55 : vector<4x128xf32>
    %58 = arith.addf %56, %57 : vector<4x128xf32>
    %c0_17 = arith.constant 0 : index
    %c0_18 = arith.constant 0 : index
    %59 = vector.load %arg9[%c0_17, %c0_18] : memref<4x128xf32, #tpu.memory_space<vmem>>, vector<4x128xf32>
    tpu.vector_store %arg9[%c0_17, %c0_18], %58 {strides = array<i32>} : memref<4x128xf32, #tpu.memory_space<vmem>>, vector<4x128xf32>,
    %c0_i32_19 = arith.constant 0 : i32
    %60 = arith.cmpi eq, %arg1, %c0_i32_19 : i32
    %61 = arith.extui %60 : i1 to i32
    %c0_i32_20 = arith.constant 0 : i32
    %62 = arith.cmpi ne, %61, %c0_i32_20 : i32
    scf.if %62 {
      %c0_21 = arith.constant 0 : index
      %c0_22 = arith.constant 0 : index
      %63 = vector.load %arg9[%c0_21, %c0_22] : memref<4x128xf32, #tpu.memory_space<vmem>>, vector<4x128xf32>
      %64 = vector.shape_cast %63 : vector<4x128xf32> to vector<1x4x128xf32>
      %cst_23 = arith.constant dense<0.000000e+00> : vector<1xf32>
      %65 = vector.multi_reduction <add>, %64, %cst_23 [1, 2] : vector<1x4x128xf32> to vector<1xf32>
      %66 = vector.shape_cast %65 : vector<1xf32> to vector<1x1x1xf32>
      %67 = vector.extract %66[0, 0, 0] : f32 from vector<1x1x1xf32>
      %68 = vector.broadcast %67 : f32 to vector<1x1xf32>
      %c0_24 = arith.constant 0 : index
      %c0_25 = arith.constant 0 : index
      %c0_26 = arith.constant 0 : index
      %69 = vector.load %arg8[%c0_24, %c0_25, %c0_26] : memref<1x1x1xf32, #tpu.memory_space<vmem>>, vector<1x1x1xf32>
      %70 = vector.shape_cast %69 : vector<1x1x1xf32> to vector<1x1xf32>
      %71 = vector.shape_cast %68 : vector<1x1xf32> to vector<1x1x1xf32>
      tpu.vector_store %arg8[%c0_24, %c0_25, %c0_26], %71 {strides = array<i32>} : memref<1x1x1xf32, #tpu.memory_space<vmem>>, vector<1x1x1xf32>,
    } else {
    }
    return
  }
  func.func @transform_0(%arg0: i32, %arg1: i32) -> (i32, i32, i32) {
    %c0_i32 = arith.constant 0 : i32
    %c0_i32_0 = arith.constant 0 : i32
    return %arg0, %c0_i32, %arg1 : i32, i32, i32
  }
  func.func @transform_1(%arg0: i32, %arg1: i32) -> (i32, i32, i32) {
    %c0_i32 = arith.constant 0 : i32
    %c0_i32_0 = arith.constant 0 : i32
    return %arg0, %c0_i32, %arg1 : i32, i32, i32
  }
  func.func @transform_2(%arg0: i32, %arg1: i32) -> (i32, i32, i32) {
    %c0_i32 = arith.constant 0 : i32
    %c0_i32_0 = arith.constant 0 : i32
    return %arg0, %c0_i32, %arg1 : i32, i32, i32
  }
  func.func @transform_3(%arg0: i32, %arg1: i32) -> (i32, i32) {
    %c0_i32 = arith.constant 0 : i32
    %c0_i32_0 = arith.constant 0 : i32
    %c0_i32_1 = arith.constant 0 : i32
    return %c0_i32, %c0_i32_0 : i32, i32
  }
  func.func @transform_4(%arg0: i32, %arg1: i32) -> (i32, i32) {
    %c0_i32 = arith.constant 0 : i32
    %c0_i32_0 = arith.constant 0 : i32
    %c0_i32_1 = arith.constant 0 : i32
    return %c0_i32, %c0_i32_0 : i32, i32
  }
  func.func @transform_5(%arg0: i32, %arg1: i32) -> (i32, i32) {
    %c0_i32 = arith.constant 0 : i32
    %c0_i32_0 = arith.constant 0 : i32
    %c0_i32_1 = arith.constant 0 : i32
    return %c0_i32, %c0_i32_0 : i32, i32
  }
  func.func @transform_6(%arg0: i32, %arg1: i32) -> (i32, i32, i32) {
    %c0_i32 = arith.constant 0 : i32
    %c0_i32_0 = arith.constant 0 : i32
    %c0_i32_1 = arith.constant 0 : i32
    return %arg0, %c0_i32, %c0_i32_0 : i32, i32, i32
  }
}

</mosaic_0001>

<bundles_post_ra>
// kernel: tpu_custom_call.1
= control target key start
LH: loop header
LB: loop body
LE: loop exit
PB: predicated region body
PF: predicated region fallthrough
CT: control target
= control target key end

     0   :  { %s1376_s0 = inlined_call_operand.hbm [shape: f32[2,1,128], index: 0, kind: input, shape index: {}]   ;;  %s1377_s1 = inlined_call_operand.vmem [shape: f32[2,4,128], index: 1, kind: input, shape index: {}]   ;;  %s1378_s2 = inlined_call_operand.hbm [shape: f32[2,4,128], index: 2, kind: input, shape index: {}]   ;;  %s1379_s3 = inlined_call_operand.hbm [shape: f32[4,4], index: 3, kind: input, shape index: {}]   ;;  %s1380_s4 = inlined_call_operand.vmem [shape: f32[4,1], index: 4, kind: input, shape index: {}]   ;;  %s1381_s5 = inlined_call_operand.vmem [shape: f32[4,1], index: 5, kind: input, shape index: {}]   ;;  %s1382_s6 = inlined_call_operand.vmem [shape: f32[2,1,1], index: 6, kind: output, shape index: {}]  }
   0x1   :  { %1385 = sst [smem:[#allocation12_spill]] %s1379_s3 }
   0x2   :  { %11 = vsyncpa [#allocation4], 0 }
   0x3   :  { %13 = vsyncpa [#allocation4 + $0x1], 0 }
   0x4   :  { %14 = vsyncpa [#allocation6], 0 }
   0x5   :  { %16 = vsyncpa [#allocation6 + $0x1], 0  ;;  %s1181_s21 = smov 0   ;;  %s1183_s22 = smov 0  }
   0x6   :  { %s1185_s23 = smov 0   ;;  %s1187_s24 = smov 0  }
   0x7   :  { %s1189_s25 = smov 0   ;;  %s1191_s26 = smov 0  }
   0x8 LB: > { %s1383_s27 = sadd.s32 4294967295, %s1132_s26   ;;  %p56_p0 = scmp.ne.s32.totalorder %s1116_s22, %s1112_s21  ;;  %s1132_s26 = sphi %s1191_s26, %s22_s26   ;;  %s1128_s25 = sphi %s1189_s25, %s1397_s25   ;;  %s1124_s24 = sphi %s1187_s24, %s1396_s24   ;;  %s1120_s23 = sphi %s1185_s23, %s1395_s23   ;;  %s1116_s22 = sphi %s1183_s22, %s1394_s22   ;;  %s1112_s21 = sphi %s1181_s21, %s1393_s21  }
   0x9   : > { %p1213_p1 = scmp.eq.s32.totalorder %s1383_s27, 0  ;;  %p876_p2 = scmp.ge.s32.totalorder %s1132_s26, 1 }
   0xa   : > { %p212_p3 = scmp.lt.s32.totalorder %s1132_s26, 3  ;;  %s1388_s3 = sld [smem:[#allocation12_spill]] }
   0xb   : > { %p1221_p4 = por %p1213_p1, %p56_p0  ;;  %s1134_s10 = smov [#allocation7]  }
   0xc   : > { %p1228_p5 = pnand %p876_p2, %p212_p3  ;;  %s226_s11 = sshll.u32 %s1134_s10, 4  ;;  %s227_s11 = int_to_ptr.vmem [resolvable:$true] %s226_s11 }
   0xd   : > { %s34_s12 = sadd.s32 1, %s1128_s25  ;;  %s43_s13 = sadd.s32 1, %s1120_s23 }
   0xe   : > { %p903_p6 = pneg %p1228_p5  ;;  %p36_p8 = scmp.ge.s32.totalorder %s34_s12, 2 }
   0xf   : > { %p50_p9 = scmp.ne.s32.totalorder %s1120_s23, %s1116_s22  ;;  %p51_p10 = scmp.eq.s32.totalorder %s1132_s26, 0 }
  0x10   : > { %s224_s8 = sshll.u32 %s1388_s3, 4  ;;  %p904_p7 = pnand %p903_p6, %p1213_p1  ;;  %s225_s8 = int_to_ptr.hbm [resolvable:$true] %s224_s8 }
  0x11   : > { %s1399_s12 = smov (%p36_p8, %s34_s12), 0  ;;  %p52_p11 = por %p51_p10, %p50_p9 }
  0x12   : > { %906 = dma.hbm_to_vmem [thread:$0]  (!%p904_p7), %s225_s8, 64, %s227_s11, [#allocation6]  }
  0x13   : > { %1390 = sst [smem:[#allocation11_spill]] %s1399_s12  ;;  %p915_p12 = scmp.lt.s32.totalorder %s1132_s26, 2 }
  0x14   : > { %s38_s14 = ssub.s32 %s1128_s25, %s1399_s12  ;;  %s243_s15 = sand.u32 1, %s1120_s23  }
  0x15   : > { %p41_p13 = scmp.eq.s32.totalorder %s38_s14, 0  ;;  %s250_s18 = scalar_lea.hbm %s1376_s0, %s1128_s25 }
  0x16   : > { %s252_s20 = sshll.u32 %s250_s18, 4  ;;  %s246_s21 = scalar_lea.vmem [#allocation3], %s243_s15  ;;  %s253_s20 = int_to_ptr.hbm [resolvable:$true] %s252_s20 }
  0x17   : > { %s1252_s19 = scalar_select %p41_p13, %s1120_s23, %s43_s13  }
  0x18   : > { %s254_s30 = sshll.u32 %s246_s21, 4  ;;  %p908_p0 = pnand %p915_p12, %p52_p11  ;;  %s255_s30 = int_to_ptr.vmem [resolvable:$true] %s254_s30 }
  0x19   : > { %s271_s7 = sand.u32 1, %s1132_s26   ;;  %s879_s8 = sshll.u32 %s243_s15, 2 }
  0x1a   : > { %s244_s10 = scalar_lea.sflag [#allocation4], %s243_s15  ;;  %s880_s11 = sshll.u32 %s1128_s25, 2 }
  0x1b   : > { %910 = dma.hbm_to_vmem [thread:$0]  (!%p908_p0), %s253_s20, 16, %s255_s30, %s244_s10  }
  0x1c   : > { %s275_s27 = scalar_lea.vmem [#allocation5], %s879_s8  ;;  %s280_s16 = scalar_lea.hbm %s1378_s2, %s880_s11 }
  0x1d   : > { %s284_s3 = sshll.u32 %s275_s27, 4  ;;  %s282_s13 = sshll.u32 %s280_s16, 4  ;;  %s285_s3 = int_to_ptr.vmem [resolvable:$true] %s284_s3  ;;  %s283_s13 = int_to_ptr.hbm [resolvable:$true] %s282_s13 }
  0x1e   : > { %s272_s17 = scalar_lea.sflag [#allocation6], %s271_s7  ;;  %293 = sbr.rel (%p1228_p5) target bundleno = 372 (0x174), region = 44 }
  0x1f   : > { %913 = dma.hbm_to_vmem [thread:$0]  (!%p908_p0), %s283_s13, 64, %s285_s3, %s272_s17  }
  0x20   : > { %s1262_s18 = sand.u32 (!%p1228_p5), 1, %s1116_s22  }
  0x21   : > { %s296_s15 = scalar_lea.sflag (!%p1228_p5), [#allocation4], %s1262_s18  ;;  %s298_s27 = scalar_lea.vmem (!%p1228_p5), [#allocation3], %s1262_s18 }
  0x23   : > { %1099 = dma.done.wait (%p1221_p4), %s296_s15, 16  }
  0x24   : > { %1101 = vsyncadd (%p1221_p4), %s296_s15, 4294967280  ;;  %s1391_s12 = sadd.s32 4294967295, %s1132_s26   ;;  %s882_s9 = sshll.u32 %s1262_s18, 2 }
  0x25   : > { %s304_s3 = sand.u32 1, %s1391_s12   ;;  %s1273_s21 = scalar_lea.vmem [#allocation5], %s882_s9 }
  0x26   : > { %s305_s20 = scalar_lea.sflag [#allocation6], %s304_s3 }
  0x27   : > { %1103 = dma.done.wait (%p1221_p4), %s305_s20, 64  }
  0x28   : > { %1105 = vsyncadd (%p1221_p4), %s305_s20, 4294967232 }
  0x29   : > { %1107 = dma.done.wait (%p1213_p1), [#allocation6], 64  }
  0x2a   : > { %1109 = vsyncadd (%p1213_p1), [#allocation6], 4294967232  ;;  %v1135_v0 = vmov 0   ;;  %v1136_v1 = vmov 2   ;;  %v693_v2 = vld [vmem:[%s1380_s4] sm:$0xf] }
  0x2b   : > { %977 = vset.pattern.permute.xlu0 %v1135_v0  ;;  %978 = vset.pattern.permute.xlu1 %v1135_v0  ;;  %v692_v3 = vld [vmem:[#allocation7] sm:$0xf]  ;;  %v367_v4 = vld [vmem:[%s298_s27] sm:$0x1]  ;;  %v1137_v11 = vmov 1   ;;  %v1138_v12 = vmov 3  }
  0x2c   : > { %980 = vset.pattern.permute.xlu2 %v1136_v1  ;;  %696 = vperm.xlu0 %977, %v693_v2   ;;  %v1290_v5 = vmul.f32 1.5707964, %v367_v4  ;;  %v703_v7 = vld [vmem:[%s1381_s5] sm:$0xf]  ;;  %v1139_v20 = vmov 683565275  }
  0x2d   : > { %712 = vperm.xlu1 %978, %v692_v3   ;;  %726 = vperm.xlu2 %980, %v692_v3   ;;  %v1140_v22 = vmov 2475754826   ;;  %v1141_v24 = vmov 2131351028   ;;  %v1142_v26 = vmov 2102212464  }
  0x2e   : > { %v374_v6 = vand.u32 2139095040, %v1290_v5  ;;  %v371_v9 = vand.u32 2147483647, %v1290_v5  ;;  %v1143_v28 = vmov 920167782   ;;  %vm373_vm12 = vcmp.lt.s32.totalorder %v1290_v5, 0 }
  0x2f   : > { %v1144_v34 = vmov 1326507024   ;;  %p352_p1 = scmp.lt.s32.totalorder %s1124_s24, 1 }
  0x30   : > { %v375_v8 = vshrl.u32 %v374_v6, 23  ;;  %v378_v14 = vand.u32 8388607, %v371_v9  ;;  %vm372_vm13 = vcmp.le.f32.partialorder %v371_v9, 0.7853982 }
  0x31   : > { %s1401_s24 = smov (!%p352_p1, %s1124_s24), 1 }
  0x32   : > { %v885_v10 = vadd.s32 4294967169, %v375_v8  ;;  %v379_v17 = vor.u32 8388608, %v378_v14  ;;  %s884_s8 = sshll.u32 %s1401_s24, 2  ;;  %s361_s17 = scalar_lea.vmem %s1382_s6, %s1401_s24 }
  0x33   : > { %s358_s14 = scalar_lea.vmem %s1377_s1, %s884_s8 }
  0x34   : > { %706 = vperm.xlu0 %977, %v703_v7   ;;  %v381_v13 = vadd.s32 1, %v885_v10  ;;  %v1302_v36 = vshll.u32 %v379_v17, 8 }
  0x35   : > { %979 = vset.pattern.permute.xlu1 %v1137_v11  ;;  %981 = vset.pattern.permute.xlu2 %v1138_v12 }
  0x36   : > { %719 = vperm.xlu1 %979, %v692_v3   ;;  %733 = vperm.xlu2 %981, %v692_v3   ;;  %vm382_vm0 = vcmp.gt.s32.totalorder %v381_v13, 0  ;;  %v420_v48 = vand.u32 65535, %v1302_v36  ;;  %v421_v49 = vshrl.u32 %v1302_v36, 16 }
  0x37   : > { %v383_v15 = vsel %vm382_vm0, %v381_v13, 0 }
  0x38   : > { %v385_v16 = vand.u32 31, %v383_v15  ;;  %v1299_v18 = vshrl.u32 %v383_v15, 5 }
  0x3a   : > { %v386_v19 = vsub.s32 32, %v385_v16  ;;  %v388_v21 = vshll.u32 %v1139_v20, %v385_v16  ;;  %v391_v23 = vshll.u32 %v1140_v22, %v385_v16  ;;  %v394_v25 = vshll.u32 %v1141_v24, %v385_v16 }
  0x3b   : > { %v397_v27 = vshll.u32 %v1142_v26, %v385_v16  ;;  %v400_v29 = vshll.u32 %v1143_v28, %v385_v16  ;;  %vm403_vm1 = vcmp.lt.s32.totalorder %v1299_v18, 1  ;;  %vm406_vm2 = vcmp.lt.s32.totalorder %v1299_v18, 4 }
  0x3c   : > { %982 = vset.pattern.permute.xlu0 %v1138_v12  ;;  %v389_v30 = vshrl.u32 %v1140_v22, %v386_v19  ;;  %v392_v31 = vshrl.u32 %v1141_v24, %v386_v19  ;;  %v395_v32 = vshrl.u32 %v1142_v26, %v386_v19  ;;  %v398_v33 = vshrl.u32 %v1143_v28, %v386_v19 }
  0x3d   : > { %v401_v35 = vshrl.u32 %v1144_v34, %v386_v19  ;;  %vm405_vm3 = vcmp.lt.s32.totalorder %v1299_v18, 3  ;;  %vm404_vm4 = vcmp.lt.s32.totalorder %v1299_v18, 2  ;;  %v387_v56 = vshrl.u32 %v1139_v20, %v386_v19 }
  0x3e   : > { %v390_v37 = vor.u32 %v389_v30, %v388_v21  ;;  %v393_v38 = vor.u32 %v392_v31, %v391_v23  ;;  %v396_v39 = vor.u32 %v395_v32, %v394_v25  ;;  %v399_v40 = vor.u32 %v398_v33, %v397_v27 }
  0x3f   : > { %v402_v41 = vor.u32 %v401_v35, %v400_v29 }
  0x40   : > { %v411_v42 = vsel %vm403_vm1, %v390_v37, %v393_v38  ;;  %v415_v43 = vsel %vm403_vm1, %v393_v38, %v396_v39  ;;  %v412_v44 = vsel %vm406_vm2, %v399_v40, 920167782  ;;  %v407_v7 = vsel %vm403_vm1, %v387_v56, %v390_v37 }
  0x41   : > { %v416_v45 = vsel %vm406_vm2, %v402_v41, 1326507024  ;;  %v413_v46 = vsel %vm405_vm3, %v396_v39, %v412_v44  ;;  %v408_v10 = vsel %vm406_vm2, %v396_v39, 2102212464 }
  0x42   : > { %v417_v47 = vsel %vm405_vm3, %v399_v40, %v416_v45  ;;  %v414_v50 = vsel %vm404_vm4, %v411_v42, %v413_v46  ;;  %v409_v20 = vsel %vm405_vm3, %v393_v38, %v408_v10 }
  0x43   : > { %v418_v51 = vsel %vm404_vm4, %v415_v43, %v417_v47  ;;  %v444_v54 = vand.u32 65535, %v414_v50  ;;  %v445_v55 = vshrl.u32 %v414_v50, 16  ;;  %v410_v28 = vsel %vm404_vm4, %v407_v7, %v409_v20 }
  0x44   : > { %v422_v52 = vand.u32 65535, %v418_v51  ;;  %v423_v53 = vshrl.u32 %v418_v51, 16  ;;  %v464_v32 = vmul.u32 %v1302_v36, %v410_v28  ;;  %vm514_vm4 = vweird.f32 %v1290_v5 }
  0x45   : > { %v446_v60 = vmul.u32 %v444_v54, %v420_v48  ;;  %v447_v61 = vmul.u32 %v445_v55, %v420_v48  ;;  %v448_v62 = vmul.u32 %v444_v54, %v421_v49  ;;  %v449_v3 = vmul.u32 %v445_v55, %v421_v49 }
  0x46   : > { %v424_v57 = vmul.u32 %v422_v52, %v420_v48  ;;  %v425_v58 = vmul.u32 %v423_v53, %v420_v48  ;;  %v426_v59 = vmul.u32 %v422_v52, %v421_v49  ;;  %v427_v63 = vmul.u32 %v423_v53, %v421_v49 }
  0x47   : > { %v450_v4 = vshll.u32 %v447_v61, 16  ;;  %v452_v6 = vshll.u32 %v448_v62, 16  ;;  %v451_v17 = vshrl.u32 %v447_v61, 16  ;;  %v453_v24 = vshrl.u32 %v448_v62, 16 }
  0x48   : > { %v428_v1 = vshll.u32 %v425_v58, 16  ;;  %v430_v2 = vshll.u32 %v426_v59, 16  ;;  %v429_v13 = vshrl.u32 %v425_v58, 16  ;;  %v431_v21 = vshrl.u32 %v426_v59, 16 }
  0x49   : > { %vm454_vm6 = vc.u32 %v446_v60, %v450_v4  ;;  %v456_v12 = vadd.s32 %v450_v4, %v446_v60 }
  0x4a   : > { %vm432_vm5 = vc.u32 %v424_v57, %v428_v1  ;;  %v434_v8 = vadd.s32 %v428_v1, %v424_v57  ;;  %v455_v15 = vsel %vm454_vm6, 1, %v1135_v0  ;;  %vm760_vm6 = vcmask 0  }
  0x4b   : > { %v433_v11 = vsel %vm432_vm5, 1, %v1135_v0  ;;  %v457_v19 = vadd.s32 %v455_v15, %v449_v3  ;;  %vm458_vm8 = vc.u32 %v456_v12, %v452_v6  ;;  %v460_v27 = vadd.s32 %v456_v12, %v452_v6 }
  0x4c   : > { %v435_v14 = vadd.s32 %v433_v11, %v427_v63  ;;  %vm436_vm7 = vc.u32 %v434_v8, %v430_v2  ;;  %v459_v23 = vsel %vm458_vm8, 1, %v1135_v0  ;;  %vm748_vm5 = vcmask 1043456  }
  0x4d   : > { %v437_v16 = vsel %vm436_vm7, 1, %v1135_v0  ;;  %v461_v25 = vadd.s32 %v459_v23, %v457_v19  ;;  %v1145_v19 = vmov 0.0  }
  0x4e   : > { %v439_v22 = vadd.s32 %v437_v16, %v435_v14  ;;  %366 = vst [vmem:[#allocation2] sm:$0xf] %v1145_v19 }
  0x4f   : > { %v462_v29 = vadd.s32 %v461_v25, %v451_v17 }
  0x50   : > { %v440_v26 = vadd.s32 %v439_v22, %v429_v13 }
  0x51   : > { %v463_v31 = vadd.s32 %v462_v29, %v453_v24 }
  0x52   : > { %v441_v30 = vadd.s32 %v440_v26, %v431_v21 }
  0x53   : > { %v467_v33 = vadd.s32 1, %v463_v31 }
  0x54   : > { %vm466_vm9 = vc.u32 %v441_v30, %v460_v27  ;;  %v465_v18 = vadd.s32 %v460_v27, %v441_v30  ;;  %v368_v30 = vld [vmem:[%s358_s14] sm:$0xf] }
  0x55   : > { %v468_v34 = vsel %vm466_vm9, %v467_v33, %v463_v31  ;;  %v369_v31 = vld [vmem:[%s1273_s21] sm:$0xf] }
  0x56   : > { %v469_v35 = vadd.s32 %v468_v34, %v464_v32 }
  0x58   : > { %v470_v37 = vadd.s32 536870912, %v469_v35 }
  0x5a   : > { %v471_v38 = vshrl.u32 %v470_v37, 30 }
  0x5c   : > { %v472_v39 = vshll.u32 %v471_v38, 30  ;;  %v495_v56 = vsub.s32 4, %v471_v38 }
  0x5e   : > { %v473_v0 = vsub.s32 %v469_v35, %v472_v39  ;;  %v496_v60 = vsel %vm373_vm12, %v495_v56, %v471_v38  ;;  %v983_v38 = vld [vmem:[%s298_s27] ss:$0 sm:$0xff] }
  0x5f   : > { %v498_v63 = vsel %vm372_vm13, 0, %v496_v60 }
  0x60   : > { %vm474_vm10 = vcmp.lt.s32.totalorder %v473_v0, 0  ;;  %v475_v40 = vsub.s32 0, %v473_v0  ;;  %v669_v6 = vadd.s32 3, %v498_v63  ;;  %v515_v9 = vand.u32 3, %v498_v63 }
  0x62   : > { %v476_v41 = vsel %vm474_vm10, %v475_v40, %v473_v0  ;;  %v670_v12 = vand.u32 3, %v669_v6  ;;  %vm517_vm14 = vcmp.eq.s32.totalorder %v515_v9, 0  ;;  %vm520_vm15 = vcmp.eq.s32.totalorder %v515_v9, 2 }
  0x63   : > { %v477_v42 = vclz %v476_v41  ;;  %vm516_vm2 = vcmp.lt.s32.totalorder %v515_v9, 2 }
  0x64   : > { %vm672_vm0 = vcmp.eq.s32.totalorder %v670_v12, 0  ;;  %vm675_vm1 = vcmp.eq.s32.totalorder %v670_v12, 2  ;;  %vm671_vm3 = vcmp.lt.s32.totalorder %v670_v12, 2 }
  0x65   : > { %v886_v43 = vadd.s32 4294967294, %v477_v42 }
  0x67   : > { %vm887_vm11 = vcmp.lt.s32.totalorder %v886_v43, 0 }
  0x68   : > { %v480_v44 = vsel %vm887_vm11, 0, %v886_v43 }
  0x69   : > { %v481_v45 = vsub.s32 32, %v480_v44  ;;  %v482_v46 = vshll.u32 %v473_v0, %v480_v44  ;;  %v485_v47 = vsub.s32 4294967266, %v480_v44 }
  0x6b   : > { %v483_v36 = vshrl.u32 %v465_v18, %v481_v45  ;;  %v486_v48 = vadd.s32 127, %v485_v47 }
  0x6d   : > { %v484_v49 = vor.u32 %v483_v36, %v482_v46  ;;  %v487_v50 = vshll.u32 %v486_v48, 23 }
  0x6f   : > { %v488_v51 = vor.u32 4788187, %v487_v50  ;;  %v491_v52 = vcvt.s32.f32 %v484_v49 }
  0x71   : > { %v489_v53 = vand.u32 2147483647, %v488_v51 }
  0x73   : > { %v492_v54 = vmul.f32 %v491_v52, %v489_v53 }
  0x75   : > { %v493_v55 = vxor.u32 2147483648, %v492_v54 }
  0x77   : > { %v494_v57 = vsel %vm373_vm12, %v493_v55, %v492_v54 }
  0x78   : > { %v497_v58 = vsel %vm372_vm13, %v1290_v5, %v494_v57  ;;  %v740_v57 = vld [vmem:[#allocation2] sm:$0xf] }
  0x79   : > { %v499_v59 = vmul.f32 %v497_v58, %v497_v58 }
  0x7b   : > { %v507_v61 = vmul.f32 -0.00019511016, %v499_v59  ;;  %v500_v62 = vmul.f32 -0.001358992, %v499_v59 }
  0x7d   : > { %v508_v1 = vadd.f32 0.008332121, %v507_v61  ;;  %v501_v2 = vadd.f32 0.041655596, %v500_v62 }
  0x7f   : > { %v509_v3 = vmul.f32 %v508_v1, %v499_v59  ;;  %v502_v4 = vmul.f32 %v501_v2, %v499_v59 }
  0x81   : > { %v510_v7 = vadd.f32 -0.16666654, %v509_v3  ;;  %v503_v8 = vadd.f32 -0.4999988, %v502_v4 }
  0x83   : > { %v511_v10 = vmul.f32 %v510_v7, %v499_v59  ;;  %v504_v11 = vmul.f32 %v503_v8, %v499_v59 }
  0x85   : > { %v512_v13 = vadd.f32 1.0, %v511_v10  ;;  %v505_v14 = vadd.f32 1.0, %v504_v11 }
  0x87   : > { %v513_v15 = vmul.f32 %v512_v13, %v497_v58  ;;  %v521_v16 = vxor.u32 2147483648, %v505_v14  ;;  %v727_v34 = vpop.permute.xlu2 %726 }
  0x89   : > { %v518_v17 = vxor.u32 2147483648, %v513_v15  ;;  %v522_v21 = vsel %vm520_vm15, %v521_v16, %v513_v15  ;;  %v677_v23 = vsel %vm675_vm1, %v521_v16, %v513_v15 }
  0x8b   : > { %v519_v20 = vsel %vm517_vm14, %v505_v14, %v518_v17  ;;  %v674_v22 = vsel %vm672_vm0, %v505_v14, %v518_v17 }
  0x8c   : > { %v523_v24 = vsel %vm516_vm2, %v519_v20, %v522_v21  ;;  %v678_v25 = vsel %vm671_vm3, %v674_v22, %v677_v23 }
  0x8d   : > { %v524_v26 = vsel %vm514_vm4, nan, %v523_v24  ;;  %v679_v27 = vsel %vm514_vm4, nan, %v678_v25 }
  0x8e   : > { %v681_v28 = vperm.slane %v524_v26, 0  ;;  %v685_v29 = vperm.slane %v679_v27, 0 }
  0x90   : > { %v683_v32 = vmul.f32 %v681_v28, %v368_v30  ;;  %v687_v33 = vmul.f32 %v685_v29, %v369_v31  ;;  %v734_v47 = vpop.permute.xlu2 %733  ;;  %v689_v48 = vmul.f32 %v681_v28, %v369_v31  ;;  %v690_v49 = vmul.f32 %v685_v29, %v368_v30 }
  0x92   : > { %v688_v5 = vadd.f32 %v687_v33, %v683_v32  ;;  %v691_v53 = vsub.f32 %v689_v48, %v690_v49 }
  0x94   : > { %v715_v39 = vperm.slane %v688_v5, 0  ;;  %v722_v0 = vperm.slane %v688_v5, 1  ;;  %v729_v43 = vperm.slane %v688_v5, 2  ;;  %v736_v45 = vperm.slane %v688_v5, 3 }
  0x96   : > { %v730_v50 = vmul.f32 %v729_v43, %v727_v34  ;;  %v737_v52 = vmul.f32 %v736_v45, %v734_v47 }
  0x9e   : > { %v697_v35 = vpop.permute.xlu0 %696 }
  0x9f   : > { %v713_v37 = vpop.permute.xlu1 %712  ;;  %v702_v40 = vmul.f32 %v983_v38, %v697_v35 }
  0xa0   : > { %v716_v42 = vmul.f32 %v715_v39, %v713_v37 }
  0xa6   : > { %v707_v41 = vpop.permute.xlu0 %706 }
  0xa7   : > { %v709_v18 = vadd.f32 %v707_v41, %v702_v40 }
  0xa8   : > { %v720_v44 = vpop.permute.xlu1 %719 }
  0xa9   : > { %v723_v46 = vmul.f32 %v722_v0, %v720_v44  ;;  %v717_v36 = vadd.f32 %v716_v42, %v709_v18 }
  0xab   : > { %v724_v51 = vadd.f32 %v723_v46, %v717_v36 }
  0xad   : > { %v731_v54 = vadd.f32 %v730_v50, %v724_v51 }
  0xaf   : > { %v738_v55 = vadd.f32 %v737_v52, %v731_v54 }
  0xb1   : > { %v739_v56 = vsub.f32 %v738_v55, %v691_v53 }
  0xb3   : > { %v741_v58 = vmul.f32 %v739_v56, %v739_v56 }
  0xb5   : > { %v742_v59 = vadd.f32 %v741_v58, %v740_v57 }
  0xb7   : > { %743 = vst [vmem:[#allocation2] sm:$0xf] %v742_v59 }
  0xbe   : > { %v747_v60 = vld [vmem:[#allocation2] sm:$0xf] }
  0xbf   : > { %v749_v61 = vsel %vm748_vm5, %v747_v60, 0.0 }
  0xc0   : > { %750 = vadd.xlane.f32.xlu0 %v749_v61 }
 0x133   : > { %v751_v62 = vpop.xlane.xlu0 %750 }
 0x134   : > { %v752_v63 = vrot.slane %v751_v62, 4 }
 0x136   : > { %v753_v1 = vadd.f32 %v752_v63, %v751_v62 }
 0x138   : > { %v754_v2 = vrot.slane %v753_v1, 2 }
 0x13a   : > { %v755_v3 = vadd.f32 %v754_v2, %v753_v1 }
 0x13c   : > { %v756_v4 = vrot.slane %v755_v3, 1 }
 0x13e   : > { %v757_v6 = vadd.f32 %v756_v4, %v755_v3 }
 0x140   : > { %893 = vpush %v757_v6 }
 0x171   : > { %s894_s18 = spop %893 }
 0x172   : > { %v759_v7 = vstv %s894_s18 }
 0x173   : > { %761 = vst.msk [vmem:[%s361_s17] sm:$0x1] %vm760_vm6, %v759_v7 }
 0x174 PF: > { %s22_s26 = sadd.s32 1, %s1132_s26   ;;  %s1392_s15 = sld [smem:[#allocation11_spill]] }
 0x175   : > { %p19_p2 = scmp.ge.s32.totalorder %s22_s26, 4   ;;  %s1393_s21 = smov %s1116_s22 }
 0x176   : > { %s1394_s22 = smov %s1120_s23  ;;  %s1395_s23 = smov %s1252_s19 }
 0x177   : > { %s1396_s24 = smov %s1128_s25  ;;  %21 = sbr.rel (!%p19_p2) target bundleno = 8 (0x8), region = 112 }
 0x17a   : > { %s1397_s25 = smov %s1392_s15 }
 0x17c   :  { %779 = vsyncpa [#allocation4], 1 }
 0x17d   :  { %781 = vsyncpa [#allocation4 + $0x1], 1 }
 0x17e   :  { %782 = vsyncpa [#allocation6], 1 }
 0x17f   :  { %784 = vsyncpa [#allocation6 + $0x1], 1 }

</bundles_post_ra>
